<compile_context>
chip_gen: v7x
topology: tpu7x:2x2x1
jax: 0.10.0
libtpu: 0.0.40
codegen_flags: <defaults>
</compile_context>

<pallas_src>
import functools

import jax
import jax.numpy as jnp
from jax.experimental import pallas as pl
from jax.experimental.pallas import tpu as pltpu

BN_EPS = 1e-5
LANE = 128

_VMEM_LIMIT_CACHE = None


def _vmem_limit_bytes():
    """Scoped-VMEM budget: 3/4 of physical, capped at 100 MiB (v5e/v6e)."""
    global _VMEM_LIMIT_CACHE
    if _VMEM_LIMIT_CACHE is None:
        phys = 64 * 1024 * 1024  # conservative default = v7x per-TC VMEM
        try:
            phys = int(pltpu.get_tpu_info().vmem_capacity_bytes)
        except Exception:
            pass
        _VMEM_LIMIT_CACHE = min(int(phys * 3 // 4), 100 * 1024 * 1024)
    return _VMEM_LIMIT_CACHE


def _pad_axis(a, axis, mult):
    pad = (-a.shape[axis]) % mult
    if pad == 0:
        return a
    widths = [(0, 0)] * a.ndim
    widths[axis] = (0, pad)
    return jnp.pad(a, widths)


def _pick_tile_h(batch, in_p, out_p, hid_p, vmem_limit):
    """Largest hidden-tile width (multiple of 128, divides hid_p, <= 2048) whose
    double-buffered bf16 weight panels fit the VMEM budget."""
    fixed = batch * in_p * 2           # resident bf16 x block
    fixed += 2 * batch * out_p * 4     # resident f32 output block + slack
    fixed += 2 * out_p * 4             # b2 (tiny, double-buffered)
    fixed += 1 << 20                   # compiler internal-scratch slack
    # per hidden element: 2-buffered bf16 w1 column + w2 row, f32 gamma/beta.
    per_hidden = 2 * (in_p + out_p) * 2 + 2 * 2 * 4
    avail = max(vmem_limit - fixed, per_hidden * LANE)
    n128 = hid_p // LANE
    best = LANE
    for k in range(1, n128 + 1):
        cand = k * LANE
        if cand > 2048:
            break
        if n128 % k == 0 and cand * per_hidden <= avail:
            best = cand
    return best


# --------------------------------------------------------------------------
# Kernels
# --------------------------------------------------------------------------
def _mlp_kernel_single(x_ref, w1_ref, gamma_ref, beta_ref, w2_ref, b2_ref, o_ref):
    """Whole hidden dim in one block: no grid, no accumulator, no predication."""
    # fc1 (bias omitted: zero-init and cancelled by training-mode BN anyway)
    h = jnp.dot(x_ref[...], w1_ref[...], preferred_element_type=jnp.float32)

    # BatchNorm1d (training-mode batch stats, biased var) + ReLU, all in f32.
    mean = jnp.mean(h, axis=0, keepdims=True)
    mean_sq = jnp.mean(h * h, axis=0, keepdims=True)
    var = jnp.maximum(mean_sq - mean * mean, 0.0)
    scale = jax.lax.rsqrt(var + BN_EPS) * gamma_ref[...]
    shift = beta_ref[...] - mean * scale
    a = jnp.maximum(h * scale + shift, 0.0)

    # Dropout: identity (eval semantics).
    y = jnp.dot(a.astype(w2_ref.dtype), w2_ref[...],
                preferred_element_type=jnp.float32) + b2_ref[...]
    o_ref[...] = 1.0 / (1.0 + jnp.exp(-y))


def _mlp_kernel_tiled(x_ref, w1_ref, gamma_ref, beta_ref, w2_ref, b2_ref, o_ref):
    """Grid over hidden tiles; fc2 partial sums accumulate directly in o_ref."""
    j = pl.program_id(0)

    @pl.when(j == 0)
    def _():
        o_ref[...] = jnp.zeros_like(o_ref)

    h = jnp.dot(x_ref[...], w1_ref[...], preferred_element_type=jnp.float32)

    mean = jnp.mean(h, axis=0, keepdims=True)
    mean_sq = jnp.mean(h * h, axis=0, keepdims=True)
    var = jnp.maximum(mean_sq - mean * mean, 0.0)
    scale = jax.lax.rsqrt(var + BN_EPS) * gamma_ref[...]
    shift = beta_ref[...] - mean * scale
    a = jnp.maximum(h * scale + shift, 0.0)

    o_ref[...] += jnp.dot(a.astype(w2_ref.dtype), w2_ref[...],
                          preferred_element_type=jnp.float32)

    @pl.when(j == pl.num_programs(0) - 1)
    def _():
        y = o_ref[...] + b2_ref[...]
        o_ref[...] = 1.0 / (1.0 + jnp.exp(-y))


# --------------------------------------------------------------------------
# Wrapper
# --------------------------------------------------------------------------
def prepare_params(w1, gamma, beta, w2, b2):
    """One-time parameter prep (call once, reuse every forward):
    pad feature dims to 128 lanes (lane-dense, zero padding is exact here) and
    cast weight matrices to bf16 for the MXU.  BN params / fc2 bias stay f32."""
    w1_p = _pad_axis(_pad_axis(jnp.asarray(w1, jnp.float32), 0, LANE), 1, LANE)
    w2_p = _pad_axis(_pad_axis(jnp.asarray(w2, jnp.float32), 0, LANE), 1, LANE)
    gamma_p = _pad_axis(jnp.asarray(gamma, jnp.float32).reshape(1, -1), 1, LANE)
    beta_p = _pad_axis(jnp.asarray(beta, jnp.float32).reshape(1, -1), 1, LANE)
    b2_p = _pad_axis(jnp.asarray(b2, jnp.float32).reshape(1, -1), 1, LANE)
    return (w1_p.astype(jnp.bfloat16), gamma_p, beta_p,
            w2_p.astype(jnp.bfloat16), b2_p)


@functools.partial(jax.jit, static_argnames=("out_size", "tile_h"))
def mlp_forward(x, w1_p, gamma_p, beta_p, w2_p, b2_p, *, out_size, tile_h=None):
    """x: (B, ...) -> (B, out_size) f32, like x.view(B, -1) -> MLP forward."""
    batch = x.shape[0]
    x2 = x.reshape(batch, -1).astype(jnp.float32)
    x_p = _pad_axis(x2, 1, LANE).astype(jnp.bfloat16)  # bf16 MXU LHS

    in_p = x_p.shape[1]
    hid_p = w1_p.shape[1]
    out_p = w2_p.shape[1]
    assert w1_p.shape[0] == in_p, "prepared w1 does not match flattened input"

    vmem_limit = _vmem_limit_bytes()
    th = tile_h if tile_h is not None else _pick_tile_h(
        batch, in_p, out_p, hid_p, vmem_limit)

    if hid_p <= th:
        # Fast path: single block, whole arrays in VMEM, no pipelining machinery.
        out_padded = pl.pallas_call(
            _mlp_kernel_single,
            out_shape=jax.ShapeDtypeStruct((batch, out_p), jnp.float32),
            compiler_params=pltpu.CompilerParams(vmem_limit_bytes=vmem_limit),
        )(x_p, w1_p, gamma_p, beta_p, w2_p, b2_p)
    else:
        assert hid_p % th == 0
        n_h = hid_p // th
        grid_spec = pltpu.PrefetchScalarGridSpec(
            num_scalar_prefetch=0,
            grid=(n_h,),
            in_specs=[
                pl.BlockSpec((batch, in_p), lambda j: (0, 0)),  # x: resident
                pl.BlockSpec((in_p, th),    lambda j: (0, j)),  # w1 column panel
                pl.BlockSpec((1, th),       lambda j: (0, j)),  # gamma
                pl.BlockSpec((1, th),       lambda j: (0, j)),  # beta
                pl.BlockSpec((th, out_p),   lambda j: (j, 0)),  # w2 row panel
                pl.BlockSpec((1, out_p),    lambda j: (0, 0)),  # b2
            ],
            out_specs=pl.BlockSpec((batch, out_p), lambda j: (0, 0)),
        )
        out_padded = pl.pallas_call(
            _mlp_kernel_tiled,
            out_shape=jax.ShapeDtypeStruct((batch, out_p), jnp.float32),
            grid_spec=grid_spec,
            compiler_params=pltpu.CompilerParams(
                # Hidden axis is the fc2 reduction (output resident across it).
                dimension_semantics=("arbitrary",),
                vmem_limit_bytes=vmem_limit,
            ),
        )(x_p, w1_p, gamma_p, beta_p, w2_p, b2_p)

    return out_padded[:, :out_size]


# --------------------------------------------------------------------------
# Reference + init helpers
# --------------------------------------------------------------------------
def xavier_uniform(key, fan_in, fan_out, dtype=jnp.float32):
    # Matches torch.nn.init.xavier_uniform_ on a (fan_out, fan_in) Linear
    # weight; stored transposed as (fan_in, fan_out).
    limit = jnp.sqrt(6.0 / (fan_in + fan_out))
    return jax.random.uniform(key, (fan_in, fan_out), dtype=dtype,
                              minval=-limit, maxval=limit)


def reference(x, w1, gamma, beta, w2, b2):
    batch = x.shape[0]
    x2 = x.reshape(batch, -1)
    h = x2 @ w1                                        # fc1 bias = 0
    mean = h.mean(axis=0, keepdims=True)
    var = ((h - mean) ** 2).mean(axis=0, keepdims=True)
    hn = (h - mean) / jnp.sqrt(var + BN_EPS) * gamma + beta
    a = jnp.maximum(hn, 0.0)
    return jax.nn.sigmoid(a @ w2 + b2)


if __name__ == "__main__":
    # batch=8, input=64 (x of shape (8,4,4,4) flattened), hidden=32, output=16.
    batch, input_size, hidden_size, output_size = 8, 64, 32, 16

    key = jax.random.PRNGKey(0)
    kx, kw1, kw2 = jax.random.split(key, 3)

    x = jax.random.normal(kx, (batch, 4, 4, 4), dtype=jnp.float32)

    w1 = xavier_uniform(kw1, input_size, hidden_size)       # (in, hidden)
    gamma = jnp.ones((1, hidden_size), dtype=jnp.float32)   # BN weight
    beta = jnp.zeros((1, hidden_size), dtype=jnp.float32)   # BN bias
    w2 = xavier_uniform(kw2, hidden_size, output_size)      # (hidden, out)
    b2 = jnp.zeros((1, output_size), dtype=jnp.float32)

    params = prepare_params(w1, gamma, beta, w2, b2)
    out = jax.block_until_ready(mlp_forward(x, *params, out_size=output_size))

    ref = reference(x, w1, gamma, beta, w2, b2)
    assert out.shape == (batch, output_size)
    # Tolerance relaxed for bf16 MXU operands (BN / sigmoid math stays f32).
    assert jnp.allclose(out, ref, atol=1e-2, rtol=1e-2), "mismatch (fast path)"

    # Second config exercising the tiled / accumulating path (forced tile_h).
    hidden2 = 512
    kw1b, kw2b = jax.random.split(kw2)
    w1b = xavier_uniform(kw1b, input_size, hidden2)
    gammab = jnp.ones((1, hidden2), dtype=jnp.float32)
    betab = jnp.zeros((1, hidden2), dtype=jnp.float32)
    w2b = xavier_uniform(kw2b, hidden2, output_size)
    b2b = jnp.zeros((1, output_size), dtype=jnp.float32)

    paramsb = prepare_params(w1b, gammab, betab, w2b, b2b)
    outb = jax.block_until_ready(
        mlp_forward(x, *paramsb, out_size=output_size, tile_h=128))
    refb = reference(x, w1b, gammab, betab, w2b, b2b)
    assert outb.shape == (batch, output_size)
    assert jnp.allclose(outb, refb, atol=1e-2, rtol=1e-2), "mismatch (tiled path)"

    print("KERNEL_OK")
</pallas_src>

<mosaic_0001>
module attributes {stable_mosaic.version = 11 : i64} {
  func.func @_mlp_kernel_single(%arg0: memref<8x128xbf16, #tpu.memory_space<vmem>>, %arg1: memref<128x128xbf16, #tpu.memory_space<vmem>>, %arg2: memref<1x128xf32, #tpu.memory_space<vmem>>, %arg3: memref<1x128xf32, #tpu.memory_space<vmem>>, %arg4: memref<128x128xbf16, #tpu.memory_space<vmem>>, %arg5: memref<1x128xf32, #tpu.memory_space<vmem>>, %arg6: memref<8x128xf32, #tpu.memory_space<vmem>>) attributes {dimension_semantics = [], scalar_prefetch = 0 : i64, scratch_operands = 0 : i64, tpu.core_type = #tpu.core_type<tc>} {
    %c0 = arith.constant 0 : index
    %c0_0 = arith.constant 0 : index
    %0 = vector.load %arg0[%c0, %c0_0] : memref<8x128xbf16, #tpu.memory_space<vmem>>, vector<8x128xbf16>
    %c0_1 = arith.constant 0 : index
    %c0_2 = arith.constant 0 : index
    %1 = vector.load %arg1[%c0_1, %c0_2] : memref<128x128xbf16, #tpu.memory_space<vmem>>, vector<128x128xbf16>
    %cst = arith.constant dense<0.000000e+00> : vector<8x128xf32>
    %2 = tpu.matmul %0, %1, %cst {dimension_numbers = #tpu.dot_dimension_numbers<[1], [0], [0], [1], [0, 0, 1, 1], [], []>} : vector<8x128xbf16>, vector<128x128xbf16>, vector<8x128xf32> -> vector<8x128xf32>
    %cst_3 = arith.constant dense<0.000000e+00> : vector<128xf32>
    %3 = vector.multi_reduction <add>, %2, %cst_3 [0] : vector<8x128xf32> to vector<128xf32>
    %4 = vector.shape_cast %3 : vector<128xf32> to vector<1x128xf32>
    %cst_4 = arith.constant 8.000000e+00 : f32
    %5 = vector.broadcast %cst_4 : f32 to vector<1x128xf32>
    %6 = arith.divf %4, %5 : vector<1x128xf32>
    %7 = arith.mulf %2, %2 : vector<8x128xf32>
    %cst_5 = arith.constant dense<0.000000e+00> : vector<128xf32>
    %8 = vector.multi_reduction <add>, %7, %cst_5 [0] : vector<8x128xf32> to vector<128xf32>
    %9 = vector.shape_cast %8 : vector<128xf32> to vector<1x128xf32>
    %cst_6 = arith.constant 8.000000e+00 : f32
    %10 = vector.broadcast %cst_6 : f32 to vector<1x128xf32>
    %11 = arith.divf %9, %10 : vector<1x128xf32>
    %12 = arith.mulf %6, %6 : vector<1x128xf32>
    %13 = arith.subf %11, %12 : vector<1x128xf32>
    %cst_7 = arith.constant 0.000000e+00 : f32
    %14 = vector.broadcast %cst_7 : f32 to vector<1x128xf32>
    %15 = arith.maximumf %13, %14 : vector<1x128xf32>
    %cst_8 = arith.constant 9.99999974E-6 : f32
    %16 = vector.broadcast %cst_8 : f32 to vector<1x128xf32>
    %17 = arith.addf %15, %16 : vector<1x128xf32>
    %18 = math.rsqrt %17 : vector<1x128xf32>
    %c0_9 = arith.constant 0 : index
    %c0_10 = arith.constant 0 : index
    %19 = vector.load %arg2[%c0_9, %c0_10] : memref<1x128xf32, #tpu.memory_space<vmem>>, vector<1x128xf32>
    %20 = arith.mulf %18, %19 : vector<1x128xf32>
    %c0_11 = arith.constant 0 : index
    %c0_12 = arith.constant 0 : index
    %21 = vector.load %arg3[%c0_11, %c0_12] : memref<1x128xf32, #tpu.memory_space<vmem>>, vector<1x128xf32>
    %22 = arith.mulf %6, %20 : vector<1x128xf32>
    %23 = arith.subf %21, %22 : vector<1x128xf32>
    %24 = vector.broadcast %20 : vector<1x128xf32> to vector<8x128xf32>
    %25 = arith.mulf %2, %24 : vector<8x128xf32>
    %26 = vector.broadcast %23 : vector<1x128xf32> to vector<8x128xf32>
    %27 = arith.addf %25, %26 : vector<8x128xf32>
    %cst_13 = arith.constant 0.000000e+00 : f32
    %28 = vector.broadcast %cst_13 : f32 to vector<8x128xf32>
    %29 = arith.maximumf %27, %28 : vector<8x128xf32>
    %30 = arith.truncf %29 : vector<8x128xf32> to vector<8x128xbf16>
    %c0_14 = arith.constant 0 : index
    %c0_15 = arith.constant 0 : index
    %31 = vector.load %arg4[%c0_14, %c0_15] : memref<128x128xbf16, #tpu.memory_space<vmem>>, vector<128x128xbf16>
    %cst_16 = arith.constant dense<0.000000e+00> : vector<8x128xf32>
    %32 = tpu.matmul %30, %31, %cst_16 {dimension_numbers = #tpu.dot_dimension_numbers<[1], [0], [0], [1], [0, 0, 1, 1], [], []>} : vector<8x128xbf16>, vector<128x128xbf16>, vector<8x128xf32> -> vector<8x128xf32>
    %c0_17 = arith.constant 0 : index
    %c0_18 = arith.constant 0 : index
    %33 = vector.load %arg5[%c0_17, %c0_18] : memref<1x128xf32, #tpu.memory_space<vmem>>, vector<1x128xf32>
    %34 = vector.broadcast %33 : vector<1x128xf32> to vector<8x128xf32>
    %35 = arith.addf %32, %34 : vector<8x128xf32>
    %cst_19 = arith.constant 0.000000e+00 : f32
    %36 = vector.broadcast %cst_19 : f32 to vector<8x128xf32>
    %37 = arith.subf %36, %35 : vector<8x128xf32>
    %38 = math.exp %37 : vector<8x128xf32>
    %cst_20 = arith.constant 1.000000e+00 : f32
    %39 = vector.broadcast %cst_20 : f32 to vector<8x128xf32>
    %40 = arith.addf %39, %38 : vector<8x128xf32>
    %cst_21 = arith.constant 1.000000e+00 : f32
    %41 = vector.broadcast %cst_21 : f32 to vector<8x128xf32>
    %42 = arith.divf %41, %40 : vector<8x128xf32>
    %c0_22 = arith.constant 0 : index
    %c0_23 = arith.constant 0 : index
    %43 = vector.load %arg6[%c0_22, %c0_23] : memref<8x128xf32, #tpu.memory_space<vmem>>, vector<8x128xf32>
    tpu.vector_store %arg6[%c0_22, %c0_23], %42 {strides = array<i32>} : memref<8x128xf32, #tpu.memory_space<vmem>>, vector<8x128xf32>,
    return
  }
}

</mosaic_0001>

<bundles_post_ra>
// kernel: mlp_forward.1
= control target key start
LH: loop header
LB: loop body
LE: loop exit
PB: predicated region body
PF: predicated region fallthrough
CT: control target
= control target key end

     0   :  { %v426_v1 = vmov 0.0   ;;  %vm427_vm0 = vmmov 0   ;;  %s536_s0 = inlined_call_operand.vmem [shape: bf16[8,128], index: 0, kind: input, shape index: {}]   ;;  %s537_s1 = inlined_call_operand.vmem [shape: bf16[128,128], index: 1, kind: input, shape index: {}]   ;;  %s538_s2 = inlined_call_operand.vmem [shape: f32[1,128], index: 2, kind: input, shape index: {}]   ;;  %s539_s3 = inlined_call_operand.vmem [shape: f32[1,128], index: 3, kind: input, shape index: {}]   ;;  %s540_s4 = inlined_call_operand.vmem [shape: bf16[128,128], index: 4, kind: input, shape index: {}]   ;;  %s541_s5 = inlined_call_operand.vmem [shape: f32[1,128], index: 5, kind: input, shape index: {}]   ;;  %s542_s6 = inlined_call_operand.hbm [shape: f32[8,128], index: 6, kind: output, shape index: {}]  }
   0x1   :  { %v380_v0 = vld [vmem:[%s537_s1] sm:$0xff]   ;;  %337 = vmatprep.subr.bf16.mxu0 %v426_v1  ;;  %357 = vmatprep.subr.bf16.mxu1 %v426_v1  ;;  %v381_v2 = vld [vmem:[%s537_s1 + $0x8] sm:$0xff]   ;;  %v382_v3 = vld [vmem:[%s537_s1 + $0x10] sm:$0xff]  }
   0x2   :  { %338 = vmatpush3.bf16.msra.mxu0 %v380_v0  ;;  %353 = vmatprep.mubr.msk.bf16.mxu0 %vm427_vm0, %v426_v1  ;;  %v383_v4 = vld [vmem:[%s537_s1 + $0x18] sm:$0xff]  }
   0x3   :  { %339 = vmatprep.subr.bf16.mxu0 %v426_v1  ;;  %373 = vmatprep.mubr.msk.bf16.mxu1 %vm427_vm0, %v426_v1 }
   0x6   :  { %340 = vmatpush3.bf16.msra.mxu0 %v381_v2 }
   0x7   :  { %341 = vmatprep.subr.bf16.mxu0 %v426_v1 }
   0xa   :  { %342 = vmatpush3.bf16.msra.mxu0 %v382_v3 }
   0xb   :  { %343 = vmatprep.subr.bf16.mxu0 %v426_v1 }
   0xc   :  { %11 = vsyncpa [#allocation3], 0  ;;  %v384_v5 = vld [vmem:[%s537_s1 + $0x20] sm:$0xff]   ;;  %v385_v6 = vld [vmem:[%s537_s1 + $0x28] sm:$0xff]   ;;  %v156_v41 = vlaneseq }
   0xd   :  { %v386_v7 = vld [vmem:[%s537_s1 + $0x30] sm:$0xff]   ;;  %v387_v8 = vld [vmem:[%s537_s1 + $0x38] sm:$0xff]   ;;  %v25_v9 = vld [vmem:[%s536_s0] sm:$0xf] }
   0xe   :  { %344 = vmatpush3.bf16.msra.mxu0 %v383_v4  ;;  %v388_v10 = vld [vmem:[%s540_s4] sm:$0xff]   ;;  %v389_v11 = vld [vmem:[%s540_s4 + $0x8] sm:$0xff]   ;;  %v390_v12 = vld [vmem:[%s540_s4 + $0x10] sm:$0xff]   ;;  %v157_v42 = vshrl.u32 %v156_v41, 7 }
   0xf   :  { %345 = vmatprep.subr.bf16.mxu0 %v426_v1  ;;  %358 = vmatpush3.bf16.msra.mxu1 %v388_v10  ;;  %v391_v13 = vld [vmem:[%s540_s4 + $0x18] sm:$0xff]   ;;  %v392_v14 = vld [vmem:[%s540_s4 + $0x20] sm:$0xff]   ;;  %v393_v15 = vld [vmem:[%s540_s4 + $0x28] sm:$0xff]  }
  0x10   :  { %359 = vmatprep.subr.bf16.mxu1 %v426_v1  ;;  %v394_v16 = vld [vmem:[%s540_s4 + $0x30] sm:$0xff]   ;;  %v395_v17 = vld [vmem:[%s540_s4 + $0x38] sm:$0xff]   ;;  %v151_v43 = vld [vmem:[%s538_s2] sm:$0x1]  ;;  %v158_v44 = vsub.s32 0, %v157_v42  ;;  %s428_s2 = smov [#allocation2]  }
  0x11   :  { %v153_v47 = vld [vmem:[%s539_s3] sm:$0x1]  ;;  %s294_s3 = sshll.u32 %s428_s2, 4  ;;  %s295_s3 = int_to_ptr.vmem [resolvable:$true] %s294_s3 }
  0x12   :  { %346 = vmatpush3.bf16.msra.mxu0 %v384_v5  ;;  %v310_v56 = vld [vmem:[%s541_s5] ss:$0 sm:$0xff]  ;;  %s402_s10 = scalar_lea.vmem %s295_s3, 128  ;;  %p407_p1 = scmp.lt.s32.totalorder %s295_s3, %s295_s3 }
  0x13   :  { %347 = vmatprep.subr.bf16.mxu0 %v426_v1  ;;  %360 = vmatpush3.bf16.msra.mxu1 %v389_v11  ;;  %p403_p0 = scmp.ne.s32.totalorder %s295_s3, %s402_s10  ;;  %p408_p2 = scmp.lt.s32.totalorder %s402_s10, %s402_s10 }
  0x14   :  { %361 = vmatprep.subr.bf16.mxu1 %v426_v1 }
  0x15   :  { %p409_p3 = por %p408_p2, %p407_p1 }
  0x16   :  { %348 = vmatpush3.bf16.msra.mxu0 %v385_v6 }
  0x17   :  { %349 = vmatprep.subr.bf16.mxu0 %v426_v1  ;;  %362 = vmatpush3.bf16.msra.mxu1 %v390_v12  ;;  %p410_p4 = pnand %p409_p3, %p403_p0 }
  0x18   :  { %363 = vmatprep.subr.bf16.mxu1 %v426_v1 }
  0x1a   :  { %350 = vmatpush3.bf16.msra.mxu0 %v386_v7 }
  0x1b   :  { %351 = vmatprep.subr.bf16.mxu0 %v426_v1  ;;  %364 = vmatpush3.bf16.msra.mxu1 %v391_v13 }
  0x1c   :  { %365 = vmatprep.subr.bf16.mxu1 %v426_v1 }
  0x1e   :  { %352 = vmatpush3.bf16.msra.mxu0 %v387_v8 }
  0x1f   :  { %366 = vmatpush3.bf16.msra.mxu1 %v392_v14 }
  0x20   :  { %367 = vmatprep.subr.bf16.mxu1 %v426_v1 }
  0x21   :  { %354 = vmatmul.mubr.bf16.vlgmr.msra.gmra.mrb[0].mxu0 %v25_v9 }
  0x23   :  { %368 = vmatpush3.bf16.msra.mxu1 %v393_v15 }
  0x24   :  { %369 = vmatprep.subr.bf16.mxu1 %v426_v1 }
  0x27   :  { %370 = vmatpush3.bf16.msra.mxu1 %v394_v16 }
  0x28   :  { %371 = vmatprep.subr.bf16.mxu1 %v426_v1 }
  0x2b   :  { %372 = vmatpush3.bf16.msra.mxu1 %v395_v17 }
  0xf4   :  { %v124_v18 = vpop.f32.mrb[0].mxu0 }
  0xf5   :  { %v130_v19 = vrot.slane %v124_v18, 4  ;;  %v138_v20 = vmul.f32 %v124_v18, %v124_v18  ;;  %v355_v21 = vpop.f32.mrb[1].mxu0 }
  0xf6   :  { %v127_v22 = vpop.f32.mrb[2].mxu0 }
  0xf7   :  { %v131_v23 = vadd.f32 %v130_v19, %v124_v18  ;;  %v139_v24 = vrot.slane %v138_v20, 4  ;;  %v356_v25 = vpop.f32.mrb[3].mxu0 }
  0xf9   :  { %v132_v26 = vrot.slane %v131_v23, 2  ;;  %v140_v27 = vadd.f32 %v139_v24, %v138_v20 }
  0xfb   :  { %v133_v28 = vadd.f32 %v132_v26, %v131_v23  ;;  %v141_v29 = vrot.slane %v140_v27, 2 }
  0xfd   :  { %v134_v30 = vrot.slane %v133_v28, 1  ;;  %v142_v31 = vadd.f32 %v141_v29, %v140_v27 }
  0xff   :  { %v135_v32 = vadd.f32 %v134_v30, %v133_v28  ;;  %v143_v33 = vrot.slane %v142_v31, 1 }
 0x101   :  { %v137_v34 = vmul.f32 0.125, %v135_v32  ;;  %v144_v35 = vadd.f32 %v143_v33, %v142_v31 }
 0x103   :  { %v145_v36 = vmul.f32 0.125, %v144_v35  ;;  %v146_v37 = vmul.f32 %v137_v34, %v137_v34 }
 0x105   :  { %v147_v38 = vsub.f32 %v145_v36, %v146_v37 }
 0x107   :  { %v148_v39 = vmax.f32 %v147_v38, 0.0 }
 0x109   :  { %v149_v40 = vadd.f32 1e-05, %v148_v39 }
 0x10b   :  { %396 = vrsqrt.f32 %v149_v40 }
 0x115   :  { %v397_v45 = vpop.eup %396 }
 0x116   :  { %v152_v46 = vmul.f32 %v397_v45, %v151_v43 }
 0x118   :  { %v159_v48 = vrot.slane %v152_v46, %v158_v44  ;;  %v154_v49 = vmul.f32 %v152_v46, %v137_v34 }
 0x11a   :  { %v155_v50 = vsub.f32 %v153_v47, %v154_v49  ;;  %v160_v51 = vmul.f32 %v159_v48, %v124_v18 }
 0x11c   :  { %v165_v52 = vrot.slane %v155_v50, %v158_v44 }
 0x11e   :  { %v167_v53 = vadd.f32 %v165_v52, %v160_v51 }
 0x120   :  { %v168_v54 = vmax.f32 %v167_v53, 0.0 }
 0x122   :  { %v169_v55 = vpack.c.bf16 %v168_v54, %v168_v54 }
 0x124   :  { %374 = vmatmul.mubr.bf16.vlgmr.msra.gmra.mrb[0].mxu1 %v169_v55 }
 0x1f7   :  { %v275_v57 = vpop.f32.mrb[0].mxu1 }
 0x1f8   :  { %v276_v58 = vadd.f32 %v310_v56, %v275_v57  ;;  %v375_v59 = vpop.f32.mrb[1].mxu1 }
 0x1f9   :  { %v278_v60 = vpop.f32.mrb[2].mxu1 }
 0x1fa   :  { %v281_v61 = vsub.f32 0.0, %v276_v58  ;;  %v376_v62 = vpop.f32.mrb[3].mxu1 }
 0x1fc   :  { %v282_v63 = vmul.f32 1.442695, %v281_v61 }
 0x1fe   :  { %398 = vpow2.f32 %v282_v63 }
 0x208   :  { %v399_v0 = vpop.eup %398 }
 0x209   :  { %v284_v1 = vadd.f32 1.0, %v399_v0 }
 0x20b   :  { %400 = vrcp.f32 %v284_v1 }
 0x215   :  { %v401_v2 = vpop.eup %400 }
 0x216   :  { %287 = vst [vmem:[#allocation2] sm:$0xff] %v401_v2 }
 0x217   :  { %413 = shalt.err (!%p410_p4)
}
 0x218   :  { %s414_s12 = scalar_lea.hbm %s542_s6, 128 }
 0x219   :  { %p415_p5 = scmp.ne.s32.totalorder %s542_s6, %s414_s12  ;;  %p418_p6 = scmp.lt.u32.totalorder %s414_s12, %s542_s6 }
 0x21b   :  { %p420_p7 = pnand %p418_p6, %p415_p5 }
 0x21d   :  { %423 = shalt.err (!%p420_p7)
}
 0x21e   :  { %297 = dma.vmem_to_hbm [thread:$0]  %s295_s3, 128, %s542_s6, [#allocation3]  }
 0x21f   :  { %424 = dma.done.wait [#allocation3], 128  }
 0x220   :  { %425 = vsyncadd [#allocation3], 4294967168 }
 0x221   :  { %301 = vsyncpa [#allocation3], 1 }

</bundles_post_ra>
